<compile_context>
chip_gen: v7x
topology: tpu7x:2x2x1
jax: 0.10.0
libtpu: 0.0.40
codegen_flags: <defaults>
</compile_context>

<pallas_src>
import functools

import jax
import jax.numpy as jnp
from jax import lax
from jax.experimental import pallas as pl
from jax.experimental.pallas import tpu as pltpu


LANES = 128
# 4096 x 128 f32 block = 2 MiB; 2 inputs x 2 pipeline buffers = 8 MiB VMEM,
# well inside the scoped-VMEM defaults (16 MiB v5e, 32 MiB v6e/v7x).
MAX_ROW_TILE = 4096


def _round_up(x, m):
    return ((x + m - 1) // m) * m


def _sublanes_for(*dtypes):
    """Minimum sublane multiple so (row_tile, 128) blocks pack for all dtypes."""
    s = 8
    for dt in dtypes:
        itemsize = int(jnp.dtype(dt).itemsize)
        s = max(s, 32 // max(itemsize, 1))
    return s


def _num_tensorcores():
    """Best-effort TensorCores-per-chip query; falls back to 1 (always safe)."""
    try:
        info = pltpu.get_tpu_info()
    except Exception:
        return 1
    for attr in ("num_cores", "tensor_cores_per_chip", "num_tensorcores",
                 "cores_per_chip", "core_count"):
        v = getattr(info, attr, None)
        if isinstance(v, int) and 1 <= v <= 16:
            return v
    return 1


def _static_pow(x, gamma):
    """x**gamma with explicit multiplies when gamma is a small non-negative int."""
    g = float(gamma)
    if g.is_integer() and 0 <= g <= 16:
        n = int(g)
        if n == 0:
            return jnp.ones_like(x)
        result = None
        base = x
        while n:
            if n & 1:
                result = base if result is None else result * base
            n >>= 1
            if n:
                base = base * base
        return result
    # TODO(synk): non-integer gamma falls back to transcendental jnp.power
    # (requires a non-negative base, which holds for valid focal-loss inputs).
    return jnp.power(x, g)


def _focal_loss_kernel(pred_ref, tgt_ref, acc_ref, *, alpha, gamma, rows,
                       row_tile, tiles_per_core, two_axis_grid, needs_mask):
    if two_axis_grid:
        p = pl.program_id(0)
        i = pl.program_id(1)
        tile_lin = p * tiles_per_core + i
    else:
        i = pl.program_id(0)
        tile_lin = i

    @pl.when(i == 0)
    def _():
        acc_ref[...] = jnp.zeros_like(acc_ref)

    pred = pred_ref[...].astype(jnp.float32)
    tgt = tgt_ref[...].astype(jnp.float32)

    def partial_sum(valid):
        # pos/neg are mutually exclusive -> one log per element.  Masked-out /
        # padded / garbage lanes select log(1)=0, base=0, weight=0, so they
        # contribute exactly zero (no 0 * (-inf) NaN hazard).  Keep this
        # neutral-operand selection pattern in any refactor.
        pos = tgt == 1.0
        neg = jnp.logical_and(tgt < 1.0, tgt >= 0.0)
        if valid is not None:
            pos = jnp.logical_and(valid, pos)
            neg = jnp.logical_and(valid, neg)
        weight = jnp.where(pos, alpha, jnp.where(neg, 1.0 - alpha, 0.0))
        log_arg = jnp.where(pos, pred, jnp.where(neg, 1.0 - pred, 1.0))
        base = jnp.where(pos, tgt - pred, jnp.where(neg, pred, 0.0))
        term = jnp.log(log_arg) * _static_pow(base, gamma) * weight
        # Vector accumulate into the resident (8, 128) output block (no
        # per-step cross-lane reduce, no scalar RMW).
        return jnp.sum(term.reshape(row_tile // 8, 8, LANES), axis=0)

    if not needs_mask:
        # Statically known: every block is fully inside the row range.
        acc_ref[...] += partial_sum(None)
    else:
        block_fully_valid = (tile_lin + 1) * row_tile <= rows

        @pl.when(block_fully_valid)
        def _():
            # Fast path: interior block, no per-element mask work.
            acc_ref[...] += partial_sum(None)

        @pl.when(jnp.logical_not(block_fully_valid))
        def _():
            # Slow path: ragged last block / clamped duplicate block.
            row_iota = lax.broadcasted_iota(jnp.int32, pred.shape, 0)
            valid = (tile_lin * row_tile + row_iota) < rows
            acc_ref[...] += partial_sum(valid)


def vanilla_focal_loss(prediction, target, alpha=0.25, gamma=2):
    """Returns the scalar loss matching Vanilla_FocalLoss.forward."""
    assert prediction.shape == target.shape
    n = int(prediction.size)

    pred_flat = jnp.reshape(prediction, (-1,))
    tgt_flat = jnp.reshape(target, (-1,))

    if n % LANES != 0:
        # Tiny tail pad (< 128 elems) with neutral values (target = -1 is
        # neither positive nor negative -> zero contribution).
        pad = LANES - n % LANES
        pred_flat = jnp.pad(pred_flat, (0, pad), constant_values=1.0)
        tgt_flat = jnp.pad(tgt_flat, (0, pad), constant_values=-1.0)

    rows = int(pred_flat.size) // LANES
    pred2d = pred_flat.reshape(rows, LANES)
    tgt2d = tgt_flat.reshape(rows, LANES)

    sublanes = _sublanes_for(pred2d.dtype, tgt2d.dtype)
    row_tile = min(_round_up(MAX_ROW_TILE, sublanes), _round_up(rows, sublanes))
    num_tiles = pl.cdiv(rows, row_tile)

    # Only shard across TensorCores when that is real hardware parallelism
    # (v7x megacore) and there is enough work; otherwise a simple 1-D grid.
    detected_cores = _num_tensorcores()
    two_axis_grid = detected_cores > 1 and num_tiles >= detected_cores

    if two_axis_grid:
        num_cores = detected_cores
        tiles_per_core = pl.cdiv(num_tiles, num_cores)
        grid = (num_cores, tiles_per_core)
        if num_cores * tiles_per_core == num_tiles:
            def in_index_map(p, i):
                return (p * tiles_per_core + i, 0)
        else:
            def in_index_map(p, i):
                # Clamp to a valid block; duplicated blocks are fully masked
                # out in the kernel via the global-row check.
                return (jnp.minimum(p * tiles_per_core + i, num_tiles - 1), 0)

        def out_index_map(p, i):
            return (p, 0, 0)

        dim_sem = (pltpu.CORE_PARALLEL, pltpu.ARBITRARY)
        needs_mask = (rows % row_tile != 0) or (num_cores * tiles_per_core != num_tiles)
    else:
        num_cores = 1
        tiles_per_core = num_tiles
        grid = (num_tiles,)

        def in_index_map(i):
            return (i, 0)

        def out_index_map(i):
            return (0, 0, 0)

        dim_sem = ("arbitrary",)
        needs_mask = rows % row_tile != 0

    kernel = functools.partial(
        _focal_loss_kernel,
        alpha=float(alpha),
        gamma=gamma,
        rows=rows,
        row_tile=row_tile,
        tiles_per_core=tiles_per_core,
        two_axis_grid=two_axis_grid,
        needs_mask=needs_mask,
    )

    n_eff = rows * LANES
    in_bytes = (int(pred2d.dtype.itemsize) + int(tgt2d.dtype.itemsize)) * n_eff
    cost = pl.CostEstimate(
        flops=20 * n_eff,
        transcendentals=n_eff,          # one log per element
        bytes_accessed=in_bytes + 4 * 8 * LANES * num_cores,
    )

    partials = pl.pallas_call(
        kernel,
        out_shape=jax.ShapeDtypeStruct((num_cores, 8, LANES), jnp.float32),
        grid_spec=pltpu.PrefetchScalarGridSpec(
            num_scalar_prefetch=0,
            grid=grid,
            in_specs=[
                pl.BlockSpec((row_tile, LANES), in_index_map),
                pl.BlockSpec((row_tile, LANES), in_index_map),
            ],
            out_specs=pl.BlockSpec((None, 8, LANES), out_index_map),
        ),
        compiler_params=pltpu.CompilerParams(dimension_semantics=dim_sem),
        cost_estimate=cost,
    )(pred2d, tgt2d)

    return -jnp.sum(partials)


def _reference(prediction, target, alpha=0.25, gamma=2):
    pred = prediction.astype(jnp.float32)
    tgt = target.astype(jnp.float32)
    pos = (tgt == 1.0).astype(jnp.float32)
    neg = jnp.logical_and(tgt < 1.0, tgt >= 0.0).astype(jnp.float32)
    pos_loss = jnp.sum(jnp.log(pred) * jnp.power(tgt - pred, gamma) * pos) * alpha
    neg_loss = jnp.sum(jnp.log(1.0 - pred) * jnp.power(pred, gamma) * neg) * (1.0 - alpha)
    return -neg_loss - pos_loss


if __name__ == "__main__":
    key = jax.random.PRNGKey(0)

    def make_inputs(k, shape):
        k_pred, k_tgt, k_mask = jax.random.split(k, 3)
        # Prediction in (0, 1) (post-sigmoid heatmap).
        logits = jax.random.normal(k_pred, shape, dtype=jnp.float32)
        prediction = jax.nn.sigmoid(logits)
        # Target: mostly values in [0, 0.9), some exact 1.0 peaks, a few -1.
        tgt_soft = jax.random.uniform(k_tgt, shape, dtype=jnp.float32) * 0.9
        sel = jax.random.uniform(k_mask, shape, dtype=jnp.float32)
        target = jnp.where(sel > 0.95, 1.0, tgt_soft)
        target = jnp.where(sel < 0.03, -1.0, target)
        return prediction, target

    k1, k2 = jax.random.split(key)

    # Main case: NCHW heatmap-style inputs, lane-aligned (fast path only).
    pred1, tgt1 = make_inputs(k1, (2, 4, 16, 16))
    loss1 = vanilla_focal_loss(pred1, tgt1)
    jax.block_until_ready(loss1)
    ref1 = _reference(pred1, tgt1)
    assert jnp.allclose(loss1, ref1, rtol=1e-4, atol=1e-4), (loss1, ref1)

    # Ragged case: exercises the neutral lane tail-pad and the masked
    # boundary-block slow path.
    pred2, tgt2 = make_inputs(k2, (2, 3, 13, 11))
    loss2 = vanilla_focal_loss(pred2, tgt2)
    jax.block_until_ready(loss2)
    ref2 = _reference(pred2, tgt2)
    assert jnp.allclose(loss2, ref2, rtol=1e-4, atol=1e-4), (loss2, ref2)

    print("KERNEL_OK")
</pallas_src>

<mosaic_0001>
module attributes {stable_mosaic.version = 11 : i64} {
  func.func @_focal_loss_kernel(%arg0: i32, %arg1: memref<16x128xf32, #tpu.memory_space<vmem>>, %arg2: memref<16x128xf32, #tpu.memory_space<vmem>>, %arg3: memref<1x8x128xf32, #tpu.memory_space<vmem>>) attributes {dimension_semantics = [#tpu.dimension_semantics<arbitrary>], iteration_bounds = array<i64: 1>, scalar_prefetch = 0 : i64, scratch_operands = 0 : i64, tpu.core_type = #tpu.core_type<tc>, window_params = [{transform_indices = @transform_0, window_bounds = array<i64: 16, 128>}, {transform_indices = @transform_1, window_bounds = array<i64: 16, 128>}, {pipeline_mode = #tpu.pipeline_mode<synchronous>, transform_indices = @transform_2, window_bounds = array<i64: 1, 8, 128>}]} {
    %c0_i32 = arith.constant 0 : i32
    %0 = arith.cmpi eq, %arg0, %c0_i32 : i32
    %1 = arith.extui %0 : i1 to i32
    %c0_i32_0 = arith.constant 0 : i32
    %2 = arith.cmpi ne, %1, %c0_i32_0 : i32
    scf.if %2 {
      %cst_19 = arith.constant 0.000000e+00 : f32
      %38 = vector.broadcast %cst_19 : f32 to vector<8x128xf32>
      %c0_20 = arith.constant 0 : index
      %c0_21 = arith.constant 0 : index
      %c0_22 = arith.constant 0 : index
      %39 = vector.load %arg3[%c0_20, %c0_21, %c0_22] : memref<1x8x128xf32, #tpu.memory_space<vmem>>, vector<1x8x128xf32>
      %40 = vector.shape_cast %39 : vector<1x8x128xf32> to vector<8x128xf32>
      %41 = vector.shape_cast %38 : vector<8x128xf32> to vector<1x8x128xf32>
      tpu.vector_store %arg3[%c0_20, %c0_21, %c0_22], %41 {strides = array<i32>} : memref<1x8x128xf32, #tpu.memory_space<vmem>>, vector<1x8x128xf32>,
    } else {
    }
    %c0 = arith.constant 0 : index
    %c0_1 = arith.constant 0 : index
    %3 = vector.load %arg1[%c0, %c0_1] : memref<16x128xf32, #tpu.memory_space<vmem>>, vector<16x128xf32>
    %c0_2 = arith.constant 0 : index
    %c0_3 = arith.constant 0 : index
    %4 = vector.load %arg2[%c0_2, %c0_3] : memref<16x128xf32, #tpu.memory_space<vmem>>, vector<16x128xf32>
    %c0_4 = arith.constant 0 : index
    %c0_5 = arith.constant 0 : index
    %c0_6 = arith.constant 0 : index
    %5 = vector.load %arg3[%c0_4, %c0_5, %c0_6] : memref<1x8x128xf32, #tpu.memory_space<vmem>>, vector<1x8x128xf32>
    %6 = vector.shape_cast %5 : vector<1x8x128xf32> to vector<8x128xf32>
    %cst = arith.constant 1.000000e+00 : f32
    %7 = vector.broadcast %cst : f32 to vector<16x128xf32>
    %8 = arith.cmpf oeq, %4, %7 : vector<16x128xf32>
    %cst_7 = arith.constant 1.000000e+00 : f32
    %9 = vector.broadcast %cst_7 : f32 to vector<16x128xf32>
    %10 = arith.cmpf olt, %4, %9 : vector<16x128xf32>
    %cst_8 = arith.constant 0.000000e+00 : f32
    %11 = vector.broadcast %cst_8 : f32 to vector<16x128xf32>
    %12 = arith.cmpf oge, %4, %11 : vector<16x128xf32>
    %13 = arith.andi %10, %12 : vector<16x128xi1>
    %cst_9 = arith.constant 7.500000e-01 : f32
    %cst_10 = arith.constant 0.000000e+00 : f32
    %14 = vector.broadcast %cst_9 : f32 to vector<16x128xf32>
    %15 = vector.broadcast %cst_10 : f32 to vector<16x128xf32>
    %16 = arith.select %13, %14, %15 : vector<16x128xi1>, vector<16x128xf32>
    %cst_11 = arith.constant 2.500000e-01 : f32
    %17 = vector.broadcast %cst_11 : f32 to vector<16x128xf32>
    %18 = arith.select %8, %17, %16 : vector<16x128xi1>, vector<16x128xf32>
    %cst_12 = arith.constant 1.000000e+00 : f32
    %19 = vector.broadcast %cst_12 : f32 to vector<16x128xf32>
    %20 = arith.subf %19, %3 : vector<16x128xf32>
    %cst_13 = arith.constant 1.000000e+00 : f32
    %21 = vector.broadcast %cst_13 : f32 to vector<16x128xf32>
    %22 = arith.select %13, %20, %21 : vector<16x128xi1>, vector<16x128xf32>
    %23 = arith.select %8, %3, %22 : vector<16x128xi1>, vector<16x128xf32>
    %24 = arith.subf %4, %3 : vector<16x128xf32>
    %cst_14 = arith.constant 0.000000e+00 : f32
    %25 = vector.broadcast %cst_14 : f32 to vector<16x128xf32>
    %26 = arith.select %13, %3, %25 : vector<16x128xi1>, vector<16x128xf32>
    %27 = arith.select %8, %24, %26 : vector<16x128xi1>, vector<16x128xf32>
    %28 = math.log %23 : vector<16x128xf32>
    %29 = arith.mulf %27, %27 : vector<16x128xf32>
    %30 = arith.mulf %28, %29 : vector<16x128xf32>
    %31 = arith.mulf %30, %18 : vector<16x128xf32>
    %32 = vector.shape_cast %31 : vector<16x128xf32> to vector<2x8x128xf32>
    %cst_15 = arith.constant dense<0.000000e+00> : vector<8x128xf32>
    %33 = vector.multi_reduction <add>, %32, %cst_15 [0] : vector<2x8x128xf32> to vector<8x128xf32>
    %34 = arith.addf %6, %33 : vector<8x128xf32>
    %c0_16 = arith.constant 0 : index
    %c0_17 = arith.constant 0 : index
    %c0_18 = arith.constant 0 : index
    %35 = vector.load %arg3[%c0_16, %c0_17, %c0_18] : memref<1x8x128xf32, #tpu.memory_space<vmem>>, vector<1x8x128xf32>
    %36 = vector.shape_cast %35 : vector<1x8x128xf32> to vector<8x128xf32>
    %37 = vector.shape_cast %34 : vector<8x128xf32> to vector<1x8x128xf32>
    tpu.vector_store %arg3[%c0_16, %c0_17, %c0_18], %37 {strides = array<i32>} : memref<1x8x128xf32, #tpu.memory_space<vmem>>, vector<1x8x128xf32>,
    return
  }
  func.func @transform_0(%arg0: i32) -> (i32, i32) {
    %c0_i32 = arith.constant 0 : i32
    %c0_i32_0 = arith.constant 0 : i32
    return %arg0, %c0_i32 : i32, i32
  }
  func.func @transform_1(%arg0: i32) -> (i32, i32) {
    %c0_i32 = arith.constant 0 : i32
    %c0_i32_0 = arith.constant 0 : i32
    return %arg0, %c0_i32 : i32, i32
  }
  func.func @transform_2(%arg0: i32) -> (i32, i32, i32) {
    %c0_i32 = arith.constant 0 : i32
    %c0_i32_0 = arith.constant 0 : i32
    %c0_i32_1 = arith.constant 0 : i32
    %c0_i32_2 = arith.constant 0 : i32
    return %c0_i32, %c0_i32_0, %c0_i32_1 : i32, i32, i32
  }
}

</mosaic_0001>

<bundles_post_ra>
// kernel: tpu_custom_call.1
= control target key start
LH: loop header
LB: loop body
LE: loop exit
PB: predicated region body
PF: predicated region fallthrough
CT: control target
= control target key end

     0   :  { %7 = vsyncpa [#allocation3], 0  ;;  %s268_s0 = inlined_call_operand.hbm [shape: f32[16,128], index: 0, kind: input, shape index: {}]   ;;  %s269_s1 = inlined_call_operand.hbm [shape: f32[16,128], index: 1, kind: input, shape index: {}]   ;;  %s270_s2 = inlined_call_operand.hbm [shape: f32[1,8,128], index: 2, kind: output, shape index: {}]  }
   0x1   :  { %8 = vsyncpa [#allocation6], 0 }
   0x2   :  { %9 = vsyncpa [#allocation4], 0  ;;  %s185_s9 = smov [#allocation2]   ;;  %s113_s13 = scalar_lea.hbm %s268_s0, 256 }
   0x3   :  { %s15_s10 = sshll.u32 %s185_s9, 4  ;;  %p114_p0 = scmp.ne.s32.totalorder %s268_s0, %s113_s13  ;;  %s16_s10 = int_to_ptr.vmem [resolvable:$true] %s15_s10 }
   0x4   :  { %p117_p1 = scmp.lt.u32.totalorder %s113_s13, %s268_s0 }
   0x6   :  { %p119_p2 = pnand %p117_p1, %p114_p0 }
   0x8   :  { %122 = shalt.err (!%p119_p2)
}
   0x9   :  { %s123_s18 = scalar_lea.vmem %s16_s10, 256  ;;  %p128_p4 = scmp.lt.s32.totalorder %s16_s10, %s16_s10 }
   0xa   :  { %p124_p3 = scmp.ne.s32.totalorder %s16_s10, %s123_s18  ;;  %p129_p5 = scmp.lt.s32.totalorder %s123_s18, %s123_s18 }
   0xc   :  { %p130_p6 = por %p129_p5, %p128_p4 }
   0xe   :  { %p131_p7 = pnand %p130_p6, %p124_p3 }
  0x10   :  { %134 = shalt.err (!%p131_p7)
}
  0x11   :  { %s186_s19 = smov 128   ;;  %s187_s20 = smov 8  }
  0x12   :  { %21 = dma.hbm_to_vmem [thread:$0]  %s268_s0, 256, %s16_s10, [#allocation3], %s186_s19, %s186_s19, %s187_s20  }
  0x13   :  { %s188_s23 = smov [#allocation5]   ;;  %s135_s27 = scalar_lea.hbm %s269_s1, 256 }
  0x14   :  { %s27_s24 = sshll.u32 %s188_s23, 4  ;;  %p136_p8 = scmp.ne.s32.totalorder %s269_s1, %s135_s27  ;;  %s28_s24 = int_to_ptr.vmem [resolvable:$true] %s27_s24 }
  0x15   :  { %p139_p9 = scmp.lt.u32.totalorder %s135_s27, %s269_s1 }
  0x17   :  { %p141_p10 = pnand %p139_p9, %p136_p8 }
  0x19   :  { %144 = shalt.err (!%p141_p10)
}
  0x1a   :  { %s145_s4 = scalar_lea.vmem %s28_s24, 256  ;;  %p150_p12 = scmp.lt.s32.totalorder %s28_s24, %s28_s24 }
  0x1b   :  { %p146_p11 = scmp.ne.s32.totalorder %s28_s24, %s145_s4  ;;  %p151_p13 = scmp.lt.s32.totalorder %s145_s4, %s145_s4 }
  0x1d   :  { %p152_p0 = por %p151_p13, %p150_p12 }
  0x1f   :  { %p153_p1 = pnand %p152_p0, %p146_p11 }
  0x21   :  { %156 = shalt.err (!%p153_p1)
}
  0x22   :  { %33 = dma.hbm_to_vmem [thread:$0]  %s269_s1, 256, %s28_s24, [#allocation6], %s186_s19, %s186_s19, %s187_s20  }
  0x23   :  { %179 = dma.done.wait [#allocation3], 256  }
  0x24   :  { %180 = vsyncadd [#allocation3], 4294967040 }
  0x25   :  { %181 = dma.done.wait [#allocation6], 256  }
  0x26   :  { %182 = vsyncadd [#allocation6], 4294967040  ;;  %v45_v0 = vld [vmem:[#allocation2] sm:$0xff]  ;;  %v46_v1 = vld [vmem:[#allocation2 + $0x8] sm:$0xff]  ;;  %v189_v18 = vmov 0.0   ;;  %s190_s1 = smov [#allocation7]  }
  0x27   :  { %v47_v2 = vld [vmem:[#allocation5] sm:$0xff]  ;;  %v48_v3 = vld [vmem:[#allocation5 + $0x8] sm:$0xff]  ;;  %v62_v4 = vsub.f32 1.0, %v45_v0  ;;  %v63_v6 = vsub.f32 1.0, %v46_v1  ;;  %s93_s6 = sshll.u32 %s190_s1, 4  ;;  %s94_s6 = int_to_ptr.vmem [resolvable:$true] %s93_s6 }
  0x28   :  { %vm50_vm0 = vcmp.eq.f32.partialorder %v47_v2, 1.0  ;;  %vm52_vm1 = vcmp.lt.f32.partialorder %v47_v2, 1.0  ;;  %vm54_vm2 = vcmp.ge.f32.partialorder %v47_v2, 0.0  ;;  %vm51_vm3 = vcmp.eq.f32.partialorder %v48_v3, 1.0  ;;  %s157_s7 = scalar_lea.vmem %s94_s6, 128  ;;  %p162_p3 = scmp.lt.s32.totalorder %s94_s6, %s94_s6 }
  0x29   :  { %vm53_vm4 = vcmp.lt.f32.partialorder %v48_v3, 1.0  ;;  %vm55_vm5 = vcmp.ge.f32.partialorder %v48_v3, 0.0  ;;  %vm230_vm6 = vmand %vm52_vm1, %vm54_vm2  ;;  %v68_v12 = vsub.f32 %v47_v2, %v45_v0  ;;  %v69_v13 = vsub.f32 %v48_v3, %v46_v1  ;;  %p158_p2 = scmp.ne.s32.totalorder %s94_s6, %s157_s7  ;;  %p163_p4 = scmp.lt.s32.totalorder %s157_s7, %s157_s7 }
  0x2a   :  { %vm234_vm7 = vmand %vm53_vm4, %vm55_vm5  ;;  %v64_v8 = vsel %vm230_vm6, %v62_v4, 1.0  ;;  %v70_v14 = vsel %vm230_vm6, %v45_v0, 0.0  ;;  %v58_v19 = vsel %vm230_vm6, 0.75, %v189_v18 }
  0x2b   :  { %v65_v9 = vsel %vm234_vm7, %v63_v6, 1.0  ;;  %v66_v10 = vsel %vm50_vm0, %v45_v0, %v64_v8  ;;  %v71_v15 = vsel %vm234_vm7, %v46_v1, 0.0  ;;  %v72_v16 = vsel %vm50_vm0, %v68_v12, %v70_v14  ;;  %p164_p5 = por %p163_p4, %p162_p3 }
  0x2c   :  { %v67_v11 = vsel %vm51_vm3, %v46_v1, %v65_v9  ;;  %109 = vlog2.f32 %v66_v10  ;;  %v73_v17 = vsel %vm51_vm3, %v69_v13, %v71_v15  ;;  %v78_v20 = vmul.f32 %v72_v16, %v72_v16 }
  0x2d   :  { %111 = vlog2.f32 %v67_v11  ;;  %v59_v22 = vsel %vm234_vm7, 0.75, %v189_v18  ;;  %v79_v23 = vmul.f32 %v73_v17, %v73_v17  ;;  %v60_v26 = vsel %vm50_vm0, 0.25, %v58_v19  ;;  %p165_p6 = pnand %p164_p5, %p158_p2 }
  0x2e   :  { %v61_v28 = vsel %vm51_vm3, 0.25, %v59_v22 }
  0x36   :  { %v110_v21 = vpop.eup %109 }
  0x37   :  { %v112_v24 = vpop.eup %111  ;;  %v75_v25 = vmul.f32 0.6931472, %v110_v21 }
  0x38   :  { %v77_v27 = vmul.f32 0.6931472, %v112_v24 }
  0x39   :  { %v80_v29 = vmul.f32 %v78_v20, %v75_v25 }
  0x3a   :  { %v81_v30 = vmul.f32 %v79_v23, %v77_v27 }
  0x3b   :  { %v82_v31 = vmul.f32 %v80_v29, %v60_v26 }
  0x3c   :  { %v83_v32 = vmul.f32 %v81_v30, %v61_v28 }
  0x3e   :  { %v84_v33 = vadd.f32 %v83_v32, %v82_v31 }
  0x40   :  { %86 = vst [vmem:[#allocation7] sm:$0xff] %v84_v33 }
  0x41   :  { %168 = shalt.err (!%p165_p6)
}
  0x42   :  { %s169_s10 = scalar_lea.hbm %s270_s2, 128 }
  0x43   :  { %p170_p7 = scmp.ne.s32.totalorder %s270_s2, %s169_s10  ;;  %p173_p8 = scmp.lt.u32.totalorder %s169_s10, %s270_s2 }
  0x45   :  { %p175_p9 = pnand %p173_p8, %p170_p7 }
  0x47   :  { %178 = shalt.err (!%p175_p9)
}
  0x48   :  { %96 = dma.vmem_to_hbm [thread:$0]  %s94_s6, 128, %s270_s2, [#allocation4]  }
  0x49   :  { %183 = dma.done.wait [#allocation4], 128  }
  0x4a   :  { %184 = vsyncadd [#allocation4], 4294967168 }
  0x4b   :  { %100 = vsyncpa [#allocation3], 1 }
  0x4c   :  { %101 = vsyncpa [#allocation6], 1 }
  0x4d   :  { %102 = vsyncpa [#allocation4], 1 }

</bundles_post_ra>
